<compile_context>
chip_gen: v7x
topology: tpu7x:2x2x1
jax: 0.10.0
libtpu: 0.0.40
codegen_flags: <defaults>
</compile_context>

<pallas_src>
import math
import functools

import jax
import jax.numpy as jnp
from jax import lax
from jax.experimental import pallas as pl
from jax.experimental.pallas import tpu as pltpu


# ------------------------------ generation-gated defaults -------------------------------

def _detect_defaults():
    kind = ""
    try:
        kind = jax.devices()[0].device_kind.lower()
    except Exception:
        kind = ""
    vmem_cap = None
    try:
        info = pltpu.get_tpu_info()
        vmem_cap = getattr(info, "vmem_capacity_bytes", None)
    except Exception:
        vmem_cap = None

    is_v5e = ("v5 lite" in kind) or ("v5e" in kind) or ("v5litepod" in kind)
    is_v7 = "v7" in kind

    if vmem_cap is not None:
        big_vmem = vmem_cap >= 100 * 1024 * 1024       # 128 MiB parts: v5e / v6e
    else:
        big_vmem = ("v5" in kind) or ("v6" in kind)

    if big_vmem:
        return {
            "vmem_limit": 64 * 1024 * 1024,   # use the 128 MiB parts' headroom
            "tk": 3072,                       # no K-tiling for K <= 3072
            "attn_block": 128 if is_v5e else 256,
        }
    # v7x (64 MiB VMEM) or unknown: conservative sizing, keep the default scoped limit.
    return {
        "vmem_limit": None,
        "tk": 512,
        "attn_block": 256 if is_v7 else 128,
    }


_DEFAULTS = _detect_defaults()


def _pick_tile(dim, preferred, granule):
    """Largest multiple of `granule` that divides `dim` and is <= `preferred`,
    falling back to the full dimension (always a legal block size)."""
    if dim <= preferred:
        return dim
    best = None
    t = granule
    while t <= preferred:
        if dim % t == 0:
            best = t
        t += granule
    return best if best is not None else dim


# ------------------------ tiled linear (+ fused bias / GELU / residual) ------------------------

def _linear_kernel(x_ref, w_ref, b_ref, *rest, activation, has_residual):
    if has_residual:
        r_ref, o_ref, acc_ref = rest
    else:
        r_ref = None
        o_ref, acc_ref = rest

    k = pl.program_id(2)

    @pl.when(k == 0)
    def _():
        acc_ref[...] = jnp.zeros_like(acc_ref)

    # bf16 MXU operands (weights/activations already stored bf16), f32 accumulation.
    acc_ref[...] += jnp.dot(
        x_ref[...].astype(jnp.bfloat16),
        w_ref[...].astype(jnp.bfloat16),
        preferred_element_type=jnp.float32,
    )

    @pl.when(k == pl.num_programs(2) - 1)
    def _():
        y = acc_ref[...] + b_ref[...]                  # bias fused into the epilogue (f32)
        if activation == "gelu":
            # tanh-approximate GELU, kept in f32
            c = 0.7978845608028654                     # sqrt(2/pi)
            y = 0.5 * y * (1.0 + jnp.tanh(c * (y + 0.044715 * y * y * y)))
        if has_residual:
            y = y + r_ref[...].astype(jnp.float32)     # fused residual add
        o_ref[...] = y.astype(o_ref.dtype)


def pallas_linear(x2d, w, b, *, activation="none", residual=None,
                  out_dtype=jnp.float32, tm=256, tn=256, tk=None):
    """x2d: (M, K) @ w: (K, N) + b: (N,) [+ residual (M, N)] -> (M, N)."""
    M, K = x2d.shape
    Kw, N = w.shape
    assert K == Kw
    if tk is None:
        tk = _DEFAULTS["tk"]
    if activation == "gelu":
        tm = min(tm, 128)                  # keep the tanh-GELU epilogue in-register
    tm = _pick_tile(M, tm, 16)             # 16-row granule: legal for bf16 and f32 blocks
    tn = _pick_tile(N, tn, 128)
    tk = _pick_tile(K, tk, 128)
    grid = (M // tm, N // tn, K // tk)

    b2d = b.reshape(1, N).astype(jnp.float32)
    has_res = residual is not None
    kernel = functools.partial(_linear_kernel, activation=activation, has_residual=has_res)

    in_specs = [
        pl.BlockSpec((tm, tk), lambda i, j, k: (i, k)),
        pl.BlockSpec((tk, tn), lambda i, j, k: (k, j)),
        pl.BlockSpec((1, tn), lambda i, j, k: (0, j)),
    ]
    args = [x2d, w, b2d]
    if has_res:
        in_specs.append(pl.BlockSpec((tm, tn), lambda i, j, k: (i, j)))
        args.append(residual)

    return pl.pallas_call(
        kernel,
        out_shape=jax.ShapeDtypeStruct((M, N), out_dtype),
        grid=grid,
        in_specs=in_specs,
        out_specs=pl.BlockSpec((tm, tn), lambda i, j, k: (i, j)),
        scratch_shapes=[pltpu.VMEM((tm, tn), jnp.float32)],
        compiler_params=pltpu.CompilerParams(
            dimension_semantics=("parallel", "parallel", "arbitrary"),
            vmem_limit_bytes=_DEFAULTS["vmem_limit"],
        ),
    )(*args)


# ----------------------------------------- layernorm ------------------------------------------

def _layernorm_kernel(x_ref, g_ref, b_ref, o_ref, *, eps):
    x = x_ref[...].astype(jnp.float32)              # (tm, C)
    mean = jnp.mean(x, axis=-1, keepdims=True)
    xc = x - mean
    var = jnp.mean(xc * xc, axis=-1, keepdims=True)
    inv = lax.rsqrt(var + eps)
    o_ref[...] = ((xc * inv) * g_ref[...] + b_ref[...]).astype(o_ref.dtype)


def pallas_layer_norm(x2d, gamma, beta, eps=1e-5, tm=256, out_dtype=jnp.bfloat16):
    M, C = x2d.shape
    tm = _pick_tile(M, tm, 16)
    kernel = functools.partial(_layernorm_kernel, eps=eps)
    return pl.pallas_call(
        kernel,
        out_shape=jax.ShapeDtypeStruct((M, C), out_dtype),
        grid=(M // tm,),
        in_specs=[
            pl.BlockSpec((tm, C), lambda i: (i, 0)),
            pl.BlockSpec((1, C), lambda i: (0, 0)),
            pl.BlockSpec((1, C), lambda i: (0, 0)),
        ],
        out_specs=pl.BlockSpec((tm, C), lambda i: (i, 0)),
        compiler_params=pltpu.CompilerParams(
            dimension_semantics=("parallel",),
            vmem_limit_bytes=_DEFAULTS["vmem_limit"],
        ),
    )(x2d, gamma.reshape(1, C).astype(jnp.float32), beta.reshape(1, C).astype(jnp.float32))


# -------------------------------- flash attention (causal) ------------------------------------

def _flash_attn_kernel(q_ref, k_ref, v_ref, o_ref, m_scr, l_scr, acc_scr, *,
                       block_q, block_k):
    qi = pl.program_id(2)
    ki = pl.program_id(3)

    @pl.when(ki == 0)
    def _():
        m_scr[...] = jnp.full(m_scr.shape, -jnp.inf, jnp.float32)
        l_scr[...] = jnp.zeros(l_scr.shape, jnp.float32)
        acc_scr[...] = jnp.zeros(acc_scr.shape, jnp.float32)

    def update(apply_mask):
        # 1/sqrt(hd) is folded into the Q columns of the qkv projection; qkv is already bf16.
        q = q_ref[0, 0, 0].astype(jnp.bfloat16)                  # (tq, hd)
        k = k_ref[0, 0, 0].astype(jnp.bfloat16)                  # (tk, hd)
        v = v_ref[0, 0, 0].astype(jnp.bfloat16)                  # (tk, hd)
        # s = q @ k^T without an explicit transpose
        s = lax.dot_general(q, k, (((1,), (1,)), ((), ())),
                            preferred_element_type=jnp.float32)  # (tq, tk) f32
        if apply_mask:  # only the diagonal block needs the causal mask
            row = qi * block_q + lax.broadcasted_iota(jnp.int32, (block_q, block_k), 0)
            col = ki * block_k + lax.broadcasted_iota(jnp.int32, (block_q, block_k), 1)
            s = jnp.where(col <= row, s, -1e30)
        m_prev = m_scr[...]
        m_new = jnp.maximum(m_prev, jnp.max(s, axis=-1, keepdims=True))
        alpha = jnp.exp(m_prev - m_new)
        p = jnp.exp(s - m_new)                                   # f32 softmax numerator
        l_scr[...] = alpha * l_scr[...] + jnp.sum(p, axis=-1, keepdims=True)
        acc_scr[...] = alpha * acc_scr[...] + lax.dot_general(
            p.astype(jnp.bfloat16), v, (((1,), (0,)), ((), ())),
            preferred_element_type=jnp.float32)
        m_scr[...] = m_new

    @pl.when(ki < qi)        # strictly below the diagonal: no mask needed
    def _():
        update(False)

    @pl.when(ki == qi)       # diagonal block: mask, then normalize + write back
    def _():
        update(True)
        # NOTE: block_q == block_k, so the diagonal step is the LAST contributing kv step.
        # ki is the innermost ("arbitrary") grid axis and the output block index is
        # independent of ki, so the block stays resident until qi changes and this write
        # is the value flushed to HBM.  Do not reorder the grid axes.
        inv_l = pl.reciprocal(l_scr[...], approx=False)   # runs once per (b,h,qi): exact
        o_ref[0, 0] = (acc_scr[...] * inv_l).astype(o_ref.dtype)
    # ki > qi: fully masked by causality -> no compute, and (via the clamped index_map)
    # no K/V DMA either.


def pallas_flash_attention(qkv, block_q=None):
    """qkv: (3, B, n_head, T, hd) bf16 -> (B, n_head, T, hd) bf16 (causal attention)."""
    _, B, nh, T, hd = qkv.shape
    if block_q is None:
        block_q = _DEFAULTS["attn_block"]
    bq = min(block_q, T)
    if T % bq != 0:
        bq = T
    bk = bq                                  # equal tiles so the diagonal block is the last one
    nq, nk = T // bq, T // bk
    kernel = functools.partial(_flash_attn_kernel, block_q=bq, block_k=bk)

    q_spec = pl.BlockSpec((1, 1, 1, bq, hd), lambda b, h, qi, ki: (0, b, h, qi, 0))
    # K/V block indices clamped to the diagonal: for fully-masked blocks (ki > qi) the block
    # index does not change vs. the previous step, so Pallas skips the useless K/V DMAs.
    k_spec = pl.BlockSpec((1, 1, 1, bk, hd),
                          lambda b, h, qi, ki: (1, b, h, jnp.minimum(ki, qi), 0))
    v_spec = pl.BlockSpec((1, 1, 1, bk, hd),
                          lambda b, h, qi, ki: (2, b, h, jnp.minimum(ki, qi), 0))
    o_spec = pl.BlockSpec((1, 1, bq, hd), lambda b, h, qi, ki: (b, h, qi, 0))

    return pl.pallas_call(
        kernel,
        out_shape=jax.ShapeDtypeStruct((B, nh, T, hd), jnp.bfloat16),
        grid=(B, nh, nq, nk),
        in_specs=[q_spec, k_spec, v_spec],
        out_specs=o_spec,
        scratch_shapes=[
            pltpu.VMEM((bq, 1), jnp.float32),   # running max m
            pltpu.VMEM((bq, 1), jnp.float32),   # running denom l
            pltpu.VMEM((bq, hd), jnp.float32),  # output accumulator
        ],
        compiler_params=pltpu.CompilerParams(
            dimension_semantics=("parallel", "parallel", "parallel", "arbitrary"),
            vmem_limit_bytes=_DEFAULTS["vmem_limit"],
        ),
    )(qkv, qkv, qkv)   # same array, three BlockSpecs (q / k / v windows)


# ------------------------------------ model composition ---------------------------------------

def causal_self_attention(h_bf16, x_res, layer, B, T, n_head):
    """h_bf16: LN output (B*T, C) bf16; x_res: residual stream (B*T, C) f32."""
    C = x_res.shape[-1]
    hd = C // n_head
    qkv = pallas_linear(h_bf16, layer["attn_w"], layer["attn_b"],
                        out_dtype=jnp.bfloat16)                         # (B*T, 3C) bf16
    # single XLA relayout to head-major, now in bf16 (half the bytes)
    # TODO(synk): fold into BlockSpecs / lane-pack heads
    qkv = qkv.reshape(B, T, 3, n_head, hd).transpose(2, 0, 3, 1, 4)     # (3, B, nh, T, hd)
    y = pallas_flash_attention(qkv)                                     # (B, nh, T, hd) bf16
    y = y.transpose(0, 2, 1, 3).reshape(B * T, C)                       # bf16
    # output projection with the residual add fused into the epilogue
    return pallas_linear(y, layer["proj_w"], layer["proj_b"],
                         residual=x_res, out_dtype=jnp.float32)          # (B*T, C) f32


def gpt_forward(idx, params, config):
    """Eval-mode GPT.forward(idx) -> sentiment_logits (targets/labels = None path).
    `params` must be the output of prepare_params (bf16 weights, scale folded into Q)."""
    B, T = idx.shape
    C = config["n_embd"]
    nh = config["n_head"]
    # embeddings: gather stays at the XLA level.  TODO(synk): Pallas gather kernel.
    x = jnp.take(params["wte"], idx, axis=0) + params["wpe"][:T][None, :, :]
    x2 = x.reshape(B * T, C)                                             # f32 residual stream
    # transformer.drop / attn_dropout / resid_dropout / mlp dropout: identity in eval mode.
    for layer in params["blocks"]:
        h = pallas_layer_norm(x2, layer["ln1_g"], layer["ln1_b"])        # bf16
        x2 = causal_self_attention(h, x2, layer, B, T, nh)               # f32 (+residual fused)
        h = pallas_layer_norm(x2, layer["ln2_g"], layer["ln2_b"])        # bf16
        h = pallas_linear(h, layer["fc_w"], layer["fc_b"],
                          activation="gelu", out_dtype=jnp.bfloat16)     # bf16
        x2 = pallas_linear(h, layer["mlp_proj_w"], layer["mlp_proj_b"],
                           residual=x2, out_dtype=jnp.float32)           # f32 (+residual fused)
    h = pallas_layer_norm(x2, params["lnf_g"], params["lnf_b"])          # (B*T, C) bf16
    last = h.reshape(B, T, C)[:, -1, :]                                  # (B, C) bf16
    return pallas_linear(last, params["sent_w"], params["sent_b"],
                         out_dtype=jnp.float32)                          # (B, num_classes)


# -------------------------- Pallas-side parameter preparation ---------------------------------

def prepare_params(params, config):
    """bf16 matmul weights (halves weight DMA / VMEM) + 1/sqrt(hd) folded into Q columns."""
    C = config["n_embd"]
    nh = config["n_head"]
    hd = C // nh
    scale = 1.0 / math.sqrt(hd)
    qcol = jnp.concatenate([jnp.full((C,), scale, jnp.float32),
                            jnp.ones((2 * C,), jnp.float32)])
    out = {
        "wte": params["wte"],
        "wpe": params["wpe"],
        "lnf_g": params["lnf_g"], "lnf_b": params["lnf_b"],
        "sent_w": params["sent_w"].astype(jnp.bfloat16),
        "sent_b": params["sent_b"],
        "blocks": [],
    }
    for layer in params["blocks"]:
        out["blocks"].append({
            "ln1_g": layer["ln1_g"], "ln1_b": layer["ln1_b"],
            "attn_w": (layer["attn_w"] * qcol[None, :]).astype(jnp.bfloat16),
            "attn_b": layer["attn_b"] * qcol,
            "proj_w": layer["proj_w"].astype(jnp.bfloat16),
            "proj_b": layer["proj_b"],
            "ln2_g": layer["ln2_g"], "ln2_b": layer["ln2_b"],
            "fc_w": layer["fc_w"].astype(jnp.bfloat16),
            "fc_b": layer["fc_b"],
            "mlp_proj_w": layer["mlp_proj_w"].astype(jnp.bfloat16),
            "mlp_proj_b": layer["mlp_proj_b"],
        })
    return out


# ------------------------------------- plain-JAX reference ------------------------------------

def _ref_layer_norm(x, g, b, eps=1e-5):
    m = jnp.mean(x, axis=-1, keepdims=True)
    v = jnp.mean((x - m) ** 2, axis=-1, keepdims=True)
    return (x - m) * lax.rsqrt(v + eps) * g + b


def _ref_gelu_tanh(x):
    c = 0.7978845608028654
    return 0.5 * x * (1.0 + jnp.tanh(c * (x + 0.044715 * x ** 3)))


def reference_gpt(idx, params, config):
    B, T = idx.shape
    C, nh = config["n_embd"], config["n_head"]
    hd = C // nh
    x = jnp.take(params["wte"], idx, axis=0) + params["wpe"][:T][None, :, :]
    mask = jnp.tril(jnp.ones((T, T), dtype=bool))
    for layer in params["blocks"]:
        h = _ref_layer_norm(x, layer["ln1_g"], layer["ln1_b"])
        qkv = h @ layer["attn_w"] + layer["attn_b"]
        q, k, v = jnp.split(qkv, 3, axis=-1)
        q = q.reshape(B, T, nh, hd).transpose(0, 2, 1, 3)
        k = k.reshape(B, T, nh, hd).transpose(0, 2, 1, 3)
        v = v.reshape(B, T, nh, hd).transpose(0, 2, 1, 3)
        att = jnp.einsum("bhqd,bhkd->bhqk", q, k) / math.sqrt(hd)
        att = jnp.where(mask[None, None], att, -jnp.inf)
        att = jax.nn.softmax(att, axis=-1)
        y = jnp.einsum("bhqk,bhkd->bhqd", att, v)
        y = y.transpose(0, 2, 1, 3).reshape(B, T, C)
        x = x + (y @ layer["proj_w"] + layer["proj_b"])
        h = _ref_layer_norm(x, layer["ln2_g"], layer["ln2_b"])
        h = _ref_gelu_tanh(h @ layer["fc_w"] + layer["fc_b"])
        x = x + (h @ layer["mlp_proj_w"] + layer["mlp_proj_b"])
    x = _ref_layer_norm(x, params["lnf_g"], params["lnf_b"])
    return x[:, -1, :] @ params["sent_w"] + params["sent_b"]


# ----------------------------------------- parameters -----------------------------------------

def init_params(key, config):
    C = config["n_embd"]
    V = config["vocab_size"]
    L = config["n_layer"]
    nc = config["num_classes"]
    bs = config["block_size"]
    keys = jax.random.split(key, 4 + 8 * L)
    it = iter(keys)
    # init scale chosen for a well-conditioned numerical test (forward semantics do not
    # depend on init values; torch uses std=0.02).
    std = 0.1

    def nrm(k, shape, s=std):
        return jax.random.normal(k, shape, jnp.float32) * s

    params = {
        "wte": nrm(next(it), (V, C)),
        "wpe": nrm(next(it), (bs, C)),
        "lnf_g": jnp.ones((C,), jnp.float32),
        "lnf_b": jnp.zeros((C,), jnp.float32),
        "sent_w": nrm(next(it), (C, nc)),
        "sent_b": nrm(next(it), (nc,)),
        "blocks": [],
    }
    proj_std = std / math.sqrt(2 * L)
    for _ in range(L):
        params["blocks"].append({
            "ln1_g": jnp.ones((C,), jnp.float32),
            "ln1_b": jnp.zeros((C,), jnp.float32),
            "attn_w": nrm(next(it), (C, 3 * C)),
            "attn_b": nrm(next(it), (3 * C,)),
            "proj_w": nrm(next(it), (C, C), proj_std),
            "proj_b": nrm(next(it), (C,)),
            "ln2_g": jnp.ones((C,), jnp.float32),
            "ln2_b": jnp.zeros((C,), jnp.float32),
            "fc_w": nrm(next(it), (C, 4 * C)),
            "fc_b": nrm(next(it), (4 * C,)),
            "mlp_proj_w": nrm(next(it), (4 * C, C), proj_std),
            "mlp_proj_b": nrm(next(it), (C,)),
        })
    return params


# -------------------------------------------- main ---------------------------------------------

if __name__ == "__main__":
    config = {
        "block_size": 16,
        "vocab_size": 64,
        "n_layer": 2,
        "n_head": 4,
        "n_embd": 32,
        "num_classes": 3,
        "dropout": 0.1,   # identity in eval mode
    }
    B, T = 2, 16

    key = jax.random.PRNGKey(0)
    kp, kidx = jax.random.split(key)
    params = init_params(kp, config)
    idx = jax.random.randint(kidx, (B, T), 0, config["vocab_size"], dtype=jnp.int32)

    pallas_params = prepare_params(params, config)
    logits = gpt_forward(idx, pallas_params, config)
    logits = jax.block_until_ready(logits)

    ref = reference_gpt(idx, params, config)
    assert logits.shape == (B, config["num_classes"])

    # bf16 weights/activations on the MXU path => relaxed tolerance vs the f32 reference.
    err = float(jnp.max(jnp.abs(logits - ref)))
    scale_ref = float(jnp.max(jnp.abs(ref)))
    assert err <= 0.05 + 0.05 * scale_ref, f"mismatch vs reference: max abs err {err}"

    print("KERNEL_OK")
</pallas_src>

<mosaic_0001>
module attributes {stable_mosaic.version = 11 : i64} {
  func.func @_layernorm_kernel(%arg0: i32, %arg1: memref<32x32xf32, #tpu.memory_space<vmem>>, %arg2: memref<1x32xf32, #tpu.memory_space<vmem>>, %arg3: memref<1x32xf32, #tpu.memory_space<vmem>>, %arg4: memref<32x32xbf16, #tpu.memory_space<vmem>>) attributes {dimension_semantics = [#tpu.dimension_semantics<parallel>], iteration_bounds = array<i64: 1>, scalar_prefetch = 0 : i64, scratch_operands = 0 : i64, tpu.core_type = #tpu.core_type<tc>, window_params = [{transform_indices = @transform_0, window_bounds = array<i64: 32, 32>}, {pipeline_mode = #tpu.pipeline_mode<synchronous>, transform_indices = @transform_1, window_bounds = array<i64: 1, 32>}, {pipeline_mode = #tpu.pipeline_mode<synchronous>, transform_indices = @transform_2, window_bounds = array<i64: 1, 32>}, {transform_indices = @transform_3, window_bounds = array<i64: 32, 32>}]} {
    %c0 = arith.constant 0 : index
    %c0_0 = arith.constant 0 : index
    %0 = vector.load %arg1[%c0, %c0_0] : memref<32x32xf32, #tpu.memory_space<vmem>>, vector<32x32xf32>
    %cst = arith.constant dense<0.000000e+00> : vector<32xf32>
    %1 = vector.multi_reduction <add>, %0, %cst [1] : vector<32x32xf32> to vector<32xf32>
    %2 = vector.shape_cast %1 : vector<32xf32> to vector<32x1xf32>
    %cst_1 = arith.constant 3.200000e+01 : f32
    %3 = vector.broadcast %cst_1 : f32 to vector<32x1xf32>
    %4 = arith.divf %2, %3 : vector<32x1xf32>
    %5 = vector.broadcast %4 : vector<32x1xf32> to vector<32x32xf32>
    %6 = arith.subf %0, %5 : vector<32x32xf32>
    %7 = arith.mulf %6, %6 : vector<32x32xf32>
    %cst_2 = arith.constant dense<0.000000e+00> : vector<32xf32>
    %8 = vector.multi_reduction <add>, %7, %cst_2 [1] : vector<32x32xf32> to vector<32xf32>
    %9 = vector.shape_cast %8 : vector<32xf32> to vector<32x1xf32>
    %cst_3 = arith.constant 3.200000e+01 : f32
    %10 = vector.broadcast %cst_3 : f32 to vector<32x1xf32>
    %11 = arith.divf %9, %10 : vector<32x1xf32>
    %cst_4 = arith.constant 9.99999974E-6 : f32
    %12 = vector.broadcast %cst_4 : f32 to vector<32x1xf32>
    %13 = arith.addf %11, %12 : vector<32x1xf32>
    %14 = math.rsqrt %13 : vector<32x1xf32>
    %15 = vector.broadcast %14 : vector<32x1xf32> to vector<32x32xf32>
    %16 = arith.mulf %6, %15 : vector<32x32xf32>
    %c0_5 = arith.constant 0 : index
    %c0_6 = arith.constant 0 : index
    %17 = vector.load %arg2[%c0_5, %c0_6] : memref<1x32xf32, #tpu.memory_space<vmem>>, vector<1x32xf32>
    %18 = vector.broadcast %17 : vector<1x32xf32> to vector<32x32xf32>
    %19 = arith.mulf %16, %18 : vector<32x32xf32>
    %c0_7 = arith.constant 0 : index
    %c0_8 = arith.constant 0 : index
    %20 = vector.load %arg3[%c0_7, %c0_8] : memref<1x32xf32, #tpu.memory_space<vmem>>, vector<1x32xf32>
    %21 = vector.broadcast %20 : vector<1x32xf32> to vector<32x32xf32>
    %22 = arith.addf %19, %21 : vector<32x32xf32>
    %23 = arith.truncf %22 : vector<32x32xf32> to vector<32x32xbf16>
    %c0_9 = arith.constant 0 : index
    %c0_10 = arith.constant 0 : index
    %24 = vector.load %arg4[%c0_9, %c0_10] : memref<32x32xbf16, #tpu.memory_space<vmem>>, vector<32x32xbf16>
    tpu.vector_store %arg4[%c0_9, %c0_10], %23 {strides = array<i32>} : memref<32x32xbf16, #tpu.memory_space<vmem>>, vector<32x32xbf16>,
    return
  }
  func.func @transform_0(%arg0: i32) -> (i32, i32) {
    %c0_i32 = arith.constant 0 : i32
    %c0_i32_0 = arith.constant 0 : i32
    return %arg0, %c0_i32 : i32, i32
  }
  func.func @transform_1(%arg0: i32) -> (i32, i32) {
    %c0_i32 = arith.constant 0 : i32
    %c0_i32_0 = arith.constant 0 : i32
    %c0_i32_1 = arith.constant 0 : i32
    return %c0_i32, %c0_i32_0 : i32, i32
  }
  func.func @transform_2(%arg0: i32) -> (i32, i32) {
    %c0_i32 = arith.constant 0 : i32
    %c0_i32_0 = arith.constant 0 : i32
    %c0_i32_1 = arith.constant 0 : i32
    return %c0_i32, %c0_i32_0 : i32, i32
  }
  func.func @transform_3(%arg0: i32) -> (i32, i32) {
    %c0_i32 = arith.constant 0 : i32
    %c0_i32_0 = arith.constant 0 : i32
    return %arg0, %c0_i32 : i32, i32
  }
}

</mosaic_0001>

<bundles_post_ra>
// kernel: tpu_custom_call.1
= control target key start
LH: loop header
LB: loop body
LE: loop exit
PB: predicated region body
PF: predicated region fallthrough
CT: control target
= control target key end

     0   :  { %8 = vsyncpa [#allocation3], 0  ;;  %s287_s0 = inlined_call_operand.hbm [shape: f32[32,32], index: 0, kind: input, shape index: {}]   ;;  %s288_s1 = inlined_call_operand.vmem [shape: f32[1,32], index: 1, kind: input, shape index: {}]   ;;  %s289_s2 = inlined_call_operand.vmem [shape: f32[1,32], index: 2, kind: input, shape index: {}]   ;;  %s290_s3 = inlined_call_operand.hbm [shape: bf16[32,32], index: 3, kind: output, shape index: {}]  }
   0x1   :  { %9 = vsyncpa [#allocation4], 0  ;;  %s219_s12 = smov [#allocation2]   ;;  %s171_s16 = scalar_lea.hbm %s287_s0, 512 }
   0x2   :  { %s15_s13 = sshll.u32 %s219_s12, 4  ;;  %p172_p0 = scmp.ne.s32.totalorder %s287_s0, %s171_s16  ;;  %s16_s13 = int_to_ptr.vmem [resolvable:$true] %s15_s13 }
   0x3   :  { %p175_p1 = scmp.lt.u32.totalorder %s171_s16, %s287_s0 }
   0x5   :  { %p177_p2 = pnand %p175_p1, %p172_p0 }
   0x7   :  { %180 = shalt.err (!%p177_p2)
}
   0x8   :  { %s181_s21 = scalar_lea.vmem %s16_s13, 512  ;;  %p186_p4 = scmp.lt.s32.totalorder %s16_s13, %s16_s13 }
   0x9   :  { %p182_p3 = scmp.ne.s32.totalorder %s16_s13, %s181_s21  ;;  %p187_p5 = scmp.lt.s32.totalorder %s181_s21, %s181_s21 }
   0xb   :  { %p188_p6 = por %p187_p5, %p186_p4 }
   0xd   :  { %p189_p7 = pnand %p188_p6, %p182_p3 }
   0xf   :  { %192 = shalt.err (!%p189_p7)
}
  0x10   :  { %s220_s22 = smov 128   ;;  %s221_s23 = smov 8  }
  0x11   :  { %21 = dma.hbm_to_vmem [thread:$0]  %s287_s0, 512, %s16_s13, [#allocation3], %s220_s22, %s220_s22, %s221_s23  }
  0x12   :  { %215 = dma.done.wait [#allocation3], 512  }
  0x13   :  { %216 = vsyncadd [#allocation3], 4294966784  ;;  %vm33_vm0 = vcmask 261120   ;;  %v29_v0 = vld [vmem:[#allocation2] sm:$0xff]  ;;  %v31_v1 = vld [vmem:[#allocation2 + $0x10] sm:$0xff]  ;;  %vm125_vm1 = vcmask 257024  }
  0x14   :  { %v30_v2 = vld [vmem:[#allocation2 + $0x8] sm:$0xff]  ;;  %v34_v3 = vsel %vm33_vm0, %v29_v0, 0.0  ;;  %v40_v4 = vsel %vm33_vm0, %v31_v1, 0.0  ;;  %v32_v5 = vld [vmem:[#allocation2 + $0x18] sm:$0xff]  ;;  %v147_v41 = vld [vmem:[%s288_s1] ss:$0 sm:$0xff] }
  0x15   :  { %35 = vadd.xlane.f32.xlu0 %v34_v3  ;;  %41 = vadd.xlane.f32.xlu1 %v40_v4  ;;  %v37_v6 = vsel %vm33_vm0, %v30_v2, 0.0  ;;  %v43_v7 = vsel %vm33_vm0, %v32_v5, 0.0  ;;  %v148_v43 = vld [vmem:[%s289_s2] ss:$0 sm:$0xff]  ;;  %s222_s1 = smov [#allocation5]  }
  0x16   :  { %s135_s2 = sshll.u32 %s222_s1, 4  ;;  %s136_s2 = int_to_ptr.vmem [resolvable:$true] %s135_s2 }
  0x17   :  { %s193_s29 = scalar_lea.vmem %s136_s2, 256  ;;  %p198_p9 = scmp.lt.s32.totalorder %s136_s2, %s136_s2 }
  0x18   :  { %p194_p8 = scmp.ne.s32.totalorder %s136_s2, %s193_s29  ;;  %p199_p10 = scmp.lt.s32.totalorder %s193_s29, %s193_s29 }
  0x19   :  { %38 = vadd.xlane.f32.xlu0 %v37_v6  ;;  %44 = vadd.xlane.f32.xlu1 %v43_v7 }
  0x1a   :  { %p200_p11 = por %p199_p10, %p198_p9 }
  0x1c   :  { %p201_p12 = pnand %p200_p11, %p194_p8 }
  0xa2   :  { %v36_v8 = vpop.xlane.xlu0 %35  ;;  %v42_v9 = vpop.xlane.xlu1 %41 }
  0xa3   :  { %v47_v10 = vmul.f32 0.03125, %v36_v8  ;;  %v49_v11 = vmul.f32 0.03125, %v42_v9 }
  0xa5   :  { %v51_v12 = vsub.f32 %v29_v0, %v47_v10  ;;  %v53_v13 = vsub.f32 %v31_v1, %v49_v11 }
  0xa6   :  { %v39_v14 = vpop.xlane.xlu0 %38  ;;  %v45_v15 = vpop.xlane.xlu1 %44 }
  0xa7   :  { %v48_v16 = vmul.f32 0.03125, %v39_v14  ;;  %v50_v17 = vmul.f32 0.03125, %v45_v15  ;;  %v55_v18 = vmul.f32 %v51_v12, %v51_v12  ;;  %v57_v19 = vmul.f32 %v53_v13, %v53_v13 }
  0xa9   :  { %v52_v20 = vsub.f32 %v30_v2, %v48_v16  ;;  %v54_v21 = vsub.f32 %v32_v5, %v50_v17  ;;  %v59_v22 = vsel %vm33_vm0, %v55_v18, 0.0  ;;  %v65_v23 = vsel %vm33_vm0, %v57_v19, 0.0 }
  0xaa   :  { %60 = vadd.xlane.f32.xlu0 %v59_v22 }
  0xab   :  { %v56_v24 = vmul.f32 %v52_v20, %v52_v20  ;;  %v58_v25 = vmul.f32 %v54_v21, %v54_v21 }
  0xad   :  { %v62_v26 = vsel %vm33_vm0, %v56_v24, 0.0  ;;  %v68_v27 = vsel %vm33_vm0, %v58_v25, 0.0 }
  0xae   :  { %66 = vadd.xlane.f32.xlu0 %v65_v23  ;;  %63 = vadd.xlane.f32.xlu1 %v62_v26 }
  0xb2   :  { %69 = vadd.xlane.f32.xlu1 %v68_v27 }
 0x137   :  { %v61_v28 = vpop.xlane.xlu0 %60 }
 0x138   :  { %v71_v29 = vmul.f32 0.03125, %v61_v28 }
 0x13a   :  { %v75_v30 = vadd.f32 1e-05, %v71_v29 }
 0x13b   :  { %v64_v31 = vpop.xlane.xlu1 %63  ;;  %v67_v32 = vpop.xlane.xlu0 %66 }
 0x13c   :  { %163 = vrsqrt.f32 %v75_v30  ;;  %v72_v33 = vmul.f32 0.03125, %v64_v31  ;;  %v73_v34 = vmul.f32 0.03125, %v67_v32 }
 0x13e   :  { %v76_v35 = vadd.f32 1e-05, %v72_v33  ;;  %v77_v36 = vadd.f32 1e-05, %v73_v34 }
 0x13f   :  { %v70_v37 = vpop.xlane.xlu1 %69 }
 0x140   :  { %165 = vrsqrt.f32 %v76_v35  ;;  %v74_v38 = vmul.f32 0.03125, %v70_v37 }
 0x141   :  { %167 = vrsqrt.f32 %v77_v36 }
 0x142   :  { %v78_v39 = vadd.f32 1e-05, %v74_v38 }
 0x144   :  { %169 = vrsqrt.f32 %v78_v39 }
 0x146   :  { %v164_v40 = vpop.eup %163 }
 0x147   :  { %v83_v42 = vmul.f32 %v164_v40, %v51_v12 }
 0x149   :  { %v94_v44 = vmul.f32 %v147_v41, %v83_v42 }
 0x14a   :  { %v166_v45 = vpop.eup %165 }
 0x14b   :  { %v168_v46 = vpop.eup %167  ;;  %v105_v47 = vadd.f32 %v148_v43, %v94_v44  ;;  %v84_v48 = vmul.f32 %v166_v45, %v52_v20 }
 0x14c   :  { %v85_v49 = vmul.f32 %v168_v46, %v53_v13 }
 0x14d   :  { %v153_v50 = vpack.c.bf16 %v105_v47, %v105_v47  ;;  %v95_v51 = vmul.f32 %v147_v41, %v84_v48 }
 0x14e   :  { %v170_v52 = vpop.eup %169  ;;  %v96_v53 = vmul.f32 %v147_v41, %v85_v49 }
 0x14f   :  { %v106_v54 = vadd.f32 %v148_v43, %v95_v51  ;;  %v86_v55 = vmul.f32 %v170_v52, %v54_v21  ;;  %126 = vst.msk [vmem:[#allocation5] sm:$0xf] %vm125_vm1, %v153_v50 }
 0x150   :  { %v107_v56 = vadd.f32 %v148_v43, %v96_v53 }
 0x151   :  { %v154_v57 = vpack.c.bf16 %v106_v54, %v106_v54  ;;  %v97_v58 = vmul.f32 %v147_v41, %v86_v55 }
 0x152   :  { %v155_v59 = vpack.c.bf16 %v107_v56, %v107_v56 }
 0x153   :  { %v108_v60 = vadd.f32 %v148_v43, %v97_v58  ;;  %127 = vst.msk [vmem:[#allocation5 + $0x4] sm:$0xf] %vm125_vm1, %v154_v57 }
 0x154   :  { %128 = vst.msk [vmem:[#allocation5 + $0x8] sm:$0xf] %vm125_vm1, %v155_v59 }
 0x155   :  { %v156_v61 = vpack.c.bf16 %v108_v60, %v108_v60 }
 0x157   :  { %129 = vst.msk [vmem:[#allocation5 + $0xc] sm:$0xf] %vm125_vm1, %v156_v61 }
 0x158   :  { %204 = shalt.err (!%p201_p12)
}
 0x159   :  { %s205_s5 = scalar_lea.hbm %s290_s3, 256 }
 0x15a   :  { %p206_p13 = scmp.ne.s32.totalorder %s290_s3, %s205_s5  ;;  %p209_p0 = scmp.lt.u32.totalorder %s205_s5, %s290_s3 }
 0x15c   :  { %p211_p1 = pnand %p209_p0, %p206_p13 }
 0x15e   :  { %214 = shalt.err (!%p211_p1)
}
 0x15f   :  { %s223_s10 = smov 64   ;;  %s224_s11 = smov 4  }
 0x160   :  { %141 = dma.vmem_to_hbm [thread:$0]  %s136_s2, 256, %s290_s3, [#allocation4], %s223_s10, %s223_s10, %s224_s11  }
 0x161   :  { %217 = dma.done.wait [#allocation4], 256  }
 0x162   :  { %218 = vsyncadd [#allocation4], 4294967040 }
 0x163   :  { %145 = vsyncpa [#allocation3], 1 }
 0x164   :  { %146 = vsyncpa [#allocation4], 1 }

</bundles_post_ra>
